<compile_context>
chip_gen: v6e
topology: v6e:2x2x1
jax: 0.10.0
libtpu: 0.0.40
codegen_flags: <defaults>
</compile_context>

<pallas_src>
import functools

import jax
import jax.numpy as jnp
from jax.experimental import pallas as pl
from jax.experimental.pallas import tpu as pltpu

_LANE = 128
# Total live VMEM budget for the pipeline (2x in-block + 2x out-block, padded).
# ~4 MiB per buffer is at the measured HBM-roofline knee on v5e/v6e and stays
# well under v7x's 64 MiB physical VMEM.
_VMEM_BUDGET_BYTES = 16 << 20
_VMEM_LIMIT_BYTES = 32 << 20


def _round_up(x, m):
    return ((x + m - 1) // m) * m


def _sublanes(itemsize):
    # Sublane packing of the second-to-last dim: 8 (4B), 16 (2B), 32 (1B).
    return max(8, 32 // max(1, itemsize))


def _pick_row_block(rows, in_row_bytes, out_row_bytes, sub,
                    vmem_budget_bytes=_VMEM_BUDGET_BYTES, target_steps=4):
    """Largest sublane-aligned row block whose double-buffered, *padded*
    (in + out) footprint fits the budget, preferring >= target_steps steps."""
    per_row = 2 * (in_row_bytes + out_row_bytes)          # x2: double buffering
    budget_r = max(1, vmem_budget_bytes // per_row)
    # Keep >= target_steps grid steps when rows allow (pipelining + megacore).
    # When rows < 2*sublanes a single step is unavoidable: the output block's
    # second-to-last dim must be a sublane multiple or the full extent.
    steps_r = max(sub, pl.cdiv(rows, target_steps))
    r = min(rows, budget_r, steps_r)
    if r < rows:
        r = max(sub, (r // sub) * sub)                    # sublane-aligned
        r = min(r, rows)
    return r


def _flatten_rows_kernel_2d(x_ref, o_ref, *, h, w):
    # x_ref: (R, H*W) lane-dense tile; o_ref: (R, W*H) lane-dense tile.
    r = x_ref.shape[0]
    # Fused per-row (H, W) -> (W, H) relayout.  This is exactly what
    # pltpu.einshape("r(hw)->r(wh)") would decompose to; kept as explicit
    # reshape + minor-dim transpose + reshape so Mosaic fuses it with the
    # load/store streams (single vst stream per output tile, no extra VMEM
    # round trip) and lowers robustly across jax versions.
    x = x_ref[...].reshape(r, h, w)
    o_ref[...] = jnp.swapaxes(x, 1, 2).reshape(r, w * h)


def _flatten_rows_kernel_3d(x_ref, o_ref):
    # x_ref: (R, H, W) tile; o_ref: (R, W*H) lane-dense tile.
    r, h, w = x_ref.shape
    o_ref[...] = jnp.swapaxes(x_ref[...], 1, 2).reshape(r, w * h)


def _common_call_kwargs(rows, h, w, itemsize):
    return dict(
        compiler_params=pltpu.CompilerParams(
            dimension_semantics=("parallel",),
            vmem_limit_bytes=_VMEM_LIMIT_BYTES,
        ),
        cost_estimate=pl.CostEstimate(
            flops=0,
            transcendentals=0,
            bytes_accessed=2 * rows * h * w * itemsize,   # read + write once
        ),
    )


def _call_2d(x2, rows, h, w):
    """Lane-dense path: input (rows, H*W) -> output (rows, W*H)."""
    itemsize = jnp.dtype(x2.dtype).itemsize
    sub = _sublanes(itemsize)
    row_bytes = _round_up(h * w, _LANE) * itemsize        # padded, per row
    R = _pick_row_block(rows, row_bytes, row_bytes, sub)
    grid = (pl.cdiv(rows, R),)
    kernel = functools.partial(_flatten_rows_kernel_2d, h=h, w=w)
    return pl.pallas_call(
        kernel,
        out_shape=jax.ShapeDtypeStruct((rows, w * h), x2.dtype),
        grid_spec=pltpu.PrefetchScalarGridSpec(
            num_scalar_prefetch=0,
            grid=grid,
            in_specs=[pl.BlockSpec((R, h * w), lambda i: (i, 0))],
            out_specs=pl.BlockSpec((R, w * h), lambda i: (i, 0)),
        ),
        **_common_call_kwargs(rows, h, w, itemsize),
    )(x2)


def _call_3d(x3, rows, h, w):
    """3-D tile path: input (rows, H, W) -> output (rows, W*H).
    Used when W is already a multiple of 128 (tile is lane-dense as-is) and as
    a fallback for the lane-dense path."""
    itemsize = jnp.dtype(x3.dtype).itemsize
    sub = _sublanes(itemsize)
    in_row_bytes = _round_up(h, sub) * _round_up(w, _LANE) * itemsize
    out_row_bytes = _round_up(w * h, _LANE) * itemsize
    R = _pick_row_block(rows, in_row_bytes, out_row_bytes, sub)
    grid = (pl.cdiv(rows, R),)
    return pl.pallas_call(
        _flatten_rows_kernel_3d,
        out_shape=jax.ShapeDtypeStruct((rows, w * h), x3.dtype),
        grid_spec=pltpu.PrefetchScalarGridSpec(
            num_scalar_prefetch=0,
            grid=grid,
            in_specs=[pl.BlockSpec((R, h, w), lambda i: (i, 0, 0))],
            out_specs=pl.BlockSpec((R, w * h), lambda i: (i, 0)),
        ),
        **_common_call_kwargs(rows, h, w, itemsize),
    )(x3)


def flatten_forward(x):
    """Equivalent of Flatten.forward for NCHW input x: transpose(3,2) + view."""
    N, C, H, W = x.shape
    rows = N * C

    # NOTE: if a single (H, W) plane is so large that one row block cannot fit
    # the VMEM budget, the transpose should additionally be tiled over (H, W);
    # not needed for typical Flatten inputs.
    if W % _LANE == 0:
        # W already lane-aligned: the 3-D tile is lane-dense, no packing needed.
        out2 = _call_3d(x.reshape(rows, H, W), rows, H, W)
    else:
        try:
            # Preferred: lane-dense input rows (contiguous DMA both ways).
            out2 = _call_2d(x.reshape(rows, H * W), rows, H, W)
        except Exception:
            # Fallback (eager calls only): if the in-kernel (R, H*W)->(R, H, W)
            # relayout fails to lower on this Mosaic version, use the proven
            # 3-D tile path.
            out2 = _call_3d(x.reshape(rows, H, W), rows, H, W)

    # view(x.size(0), -1): merging leading dims of the contiguous (N*C, W*H)
    # result is pure metadata.
    return out2.reshape(N, C * W * H)


if __name__ == "__main__":
    key = jax.random.PRNGKey(0)
    N, C, H, W = 2, 4, 16, 16
    x = jax.random.normal(key, (N, C, H, W), dtype=jnp.float32)

    out = flatten_forward(x)
    out = jax.block_until_ready(out)

    # Reference check against plain JAX (matches PyTorch semantics).
    ref = jnp.swapaxes(x, 2, 3).reshape(N, -1)
    assert out.shape == (N, C * W * H), out.shape
    assert jnp.array_equal(out, ref), "mismatch vs reference"

    print("KERNEL_OK")
</pallas_src>

<mosaic_0001>
module attributes {stable_mosaic.version = 11 : i64} {
  func.func @_flatten_rows_kernel_2d(%arg0: i32, %arg1: memref<8x256xf32, #tpu.memory_space<vmem>>, %arg2: memref<8x256xf32, #tpu.memory_space<vmem>>) attributes {dimension_semantics = [#tpu.dimension_semantics<parallel>], iteration_bounds = array<i64: 1>, scalar_prefetch = 0 : i64, scratch_operands = 0 : i64, tpu.core_type = #tpu.core_type<tc>, window_params = [{transform_indices = @transform_0, window_bounds = array<i64: 8, 256>}, {transform_indices = @transform_1, window_bounds = array<i64: 8, 256>}]} {
    %c0 = arith.constant 0 : index
    %c0_0 = arith.constant 0 : index
    %0 = vector.load %arg1[%c0, %c0_0] : memref<8x256xf32, #tpu.memory_space<vmem>>, vector<8x256xf32>
    %1 = vector.shape_cast %0 : vector<8x256xf32> to vector<8x16x16xf32>
    %2 = tpu.transpose %1, [0, 2, 1] : vector<8x16x16xf32> -> vector<8x16x16xf32>
    %3 = vector.shape_cast %2 : vector<8x16x16xf32> to vector<8x256xf32>
    %c0_1 = arith.constant 0 : index
    %c0_2 = arith.constant 0 : index
    %4 = vector.load %arg2[%c0_1, %c0_2] : memref<8x256xf32, #tpu.memory_space<vmem>>, vector<8x256xf32>
    tpu.vector_store %arg2[%c0_1, %c0_2], %3 {strides = array<i32>} : memref<8x256xf32, #tpu.memory_space<vmem>>, vector<8x256xf32>,
    return
  }
  func.func @transform_0(%arg0: i32) -> (i32, i32) {
    %c0_i32 = arith.constant 0 : i32
    %c0_i32_0 = arith.constant 0 : i32
    return %arg0, %c0_i32 : i32, i32
  }
  func.func @transform_1(%arg0: i32) -> (i32, i32) {
    %c0_i32 = arith.constant 0 : i32
    %c0_i32_0 = arith.constant 0 : i32
    return %arg0, %c0_i32 : i32, i32
  }
}

module attributes {stable_mosaic.version = 11 : i64} {
  func.func @_flatten_rows_kernel_3d(%arg0: i32, %arg1: memref<8x16x16xf32, #tpu.memory_space<vmem>>, %arg2: memref<8x256xf32, #tpu.memory_space<vmem>>) attributes {dimension_semantics = [#tpu.dimension_semantics<parallel>], iteration_bounds = array<i64: 1>, scalar_prefetch = 0 : i64, scratch_operands = 0 : i64, tpu.core_type = #tpu.core_type<tc>, window_params = [{transform_indices = @transform_0, window_bounds = array<i64: 8, 16, 16>}, {transform_indices = @transform_1, window_bounds = array<i64: 8, 256>}]} {
    %c0 = arith.constant 0 : index
    %c0_0 = arith.constant 0 : index
    %c0_1 = arith.constant 0 : index
    %0 = vector.load %arg1[%c0, %c0_0, %c0_1] : memref<8x16x16xf32, #tpu.memory_space<vmem>>, vector<8x16x16xf32>
    %1 = tpu.transpose %0, [0, 2, 1] : vector<8x16x16xf32> -> vector<8x16x16xf32>
    %2 = vector.shape_cast %1 : vector<8x16x16xf32> to vector<8x256xf32>
    %c0_2 = arith.constant 0 : index
    %c0_3 = arith.constant 0 : index
    %3 = vector.load %arg2[%c0_2, %c0_3] : memref<8x256xf32, #tpu.memory_space<vmem>>, vector<8x256xf32>
    tpu.vector_store %arg2[%c0_2, %c0_3], %2 {strides = array<i32>} : memref<8x256xf32, #tpu.memory_space<vmem>>, vector<8x256xf32>,
    return
  }
  func.func @transform_0(%arg0: i32) -> (i32, i32, i32) {
    %c0_i32 = arith.constant 0 : i32
    %c0_i32_0 = arith.constant 0 : i32
    %c0_i32_1 = arith.constant 0 : i32
    return %arg0, %c0_i32, %c0_i32_0 : i32, i32, i32
  }
  func.func @transform_1(%arg0: i32) -> (i32, i32) {
    %c0_i32 = arith.constant 0 : i32
    %c0_i32_0 = arith.constant 0 : i32
    return %arg0, %c0_i32 : i32, i32
  }
}

</mosaic_0001>

<bundles_post_ra>
// kernel: tpu_custom_call.1
= control target key start
LH: loop header
LB: loop body
LE: loop exit
PB: predicated region body
PF: predicated region fallthrough
CT: control target
= control target key end

     0   :  { %6 = vsyncpa [#allocation3], 0  ;;  %s1219_s0 = inlined_call_operand.hbm [shape: f32[8,256], index: 0, kind: input, shape index: {}]   ;;  %s1220_s1 = inlined_call_operand.hbm [shape: f32[8,256], index: 1, kind: output, shape index: {}]  }
   0x1   :  { %7 = vsyncpa [#allocation4], 0  ;;  %s1017_s6 = smov [#allocation2]  }
   0x2   :  { %s14_s7 = sshll.u32 %s1017_s6, 4  ;;  %s15_s7 = int_to_ptr.vmem [resolvable:$true] %s14_s7 }
   0x3   :  { %s981_s8 = scalar_lea.vmem %s15_s7, 256  ;;  %p986_p1 = scmp.lt.s32.totalorder %s15_s7, %s15_s7 }
   0x4   :  { %p982_p0 = scmp.ne.s32.totalorder %s15_s7, %s981_s8  ;;  %p987_p2 = scmp.lt.s32.totalorder %s981_s8, %s981_s8 }
   0x6   :  { %p988_p3 = por %p987_p2, %p986_p1 }
   0x8   :  { %p989_p4 = pnand %p988_p3, %p982_p0 }
   0xa   :  { %992 = shalt.err (!%p989_p4)
}
   0xb   :  { %17 = dma.hbm_to_vmem [thread:$0]  %s1219_s0, 256, %s15_s7, [#allocation3]  }
   0xc   :  { %1013 = dma.done.wait [#allocation3], 256  }
   0xd   :  { %1014 = vsyncadd [#allocation3], 4294967040  ;;  %v1041_v0 = vld [vmem:[#allocation2] sm:$0xff]  ;;  %s1018_s11 = smov 80   ;;  %s1019_s12 = smov 112   ;;  %v1055_v1 = vld [vmem:[#allocation2 + $0x8] sm:$0xff]  ;;  %v72_v6 = vlaneseq }
   0xe   :  { %30 = vrot.lane.b32.xlu1 %v1041_v0, %s1018_s11  ;;  %24 = vrot.lane.b32.xlu0 %v1041_v0, %s1019_s12  ;;  %s1020_s13 = smov 64   ;;  %s1021_s14 = smov 96   ;;  %v1025_v4 = vmov 1983009808   ;;  %v1026_v14 = vmov 1934713408  }
   0xf   :  { %s1022_s0 = smov 32   ;;  %s1023_s15 = smov 48   ;;  %v70_v5 = vunpack.c.l.s4 %v1025_v4  ;;  %v73_v10 = vshrl.u32 %v72_v6, 7  ;;  %v134_v15 = vunpack.c.l.s4 %v1026_v14  ;;  %vm923_vm0 = vcmask 130048  }
  0x10   :  { %s1024_s16 = smov 16   ;;  %vm925_vm1 = vcmask 261120   ;;  %vm927_vm2 = vcmask 392192   ;;  %vm929_vm3 = vcmask 523264   ;;  %vm931_vm4 = vcmask 654336   ;;  %s1027_s17 = smov [#allocation5]  }
  0x11   :  { %v71_v9 = vunpack.c.0.s8 %v70_v5  ;;  %v135_v22 = vunpack.c.0.s8 %v134_v15  ;;  %vm933_vm5 = vcmask 785408   ;;  %vm935_vm6 = vcmask 916480   ;;  %s952_s18 = sshll.u32 %s1027_s17, 4  ;;  %s953_s18 = int_to_ptr.vmem [resolvable:$true] %s952_s18 }
  0x12   :  { %33 = vrot.lane.b32.xlu1 %v1041_v0, %s1020_s13  ;;  %27 = vrot.lane.b32.xlu0 %v1041_v0, %s1021_s14  ;;  %s993_s19 = scalar_lea.vmem %s953_s18, 256  ;;  %p998_p6 = scmp.lt.s32.totalorder %s953_s18, %s953_s18 }
  0x13   :  { %v1074_v16 = vsub.s32 %v71_v9, %v73_v10  ;;  %v1083_v30 = vsub.s32 %v135_v22, %v73_v10  ;;  %p994_p5 = scmp.ne.s32.totalorder %s953_s18, %s993_s19  ;;  %p999_p7 = scmp.lt.s32.totalorder %s993_s19, %s993_s19 }
  0x15   :  { %p1000_p8 = por %p999_p7, %p998_p6 }
  0x16   :  { %39 = vrot.lane.b32.xlu1 %v1041_v0, %s1022_s0  ;;  %36 = vrot.lane.b32.xlu0 %v1041_v0, %s1023_s15 }
  0x17   :  { %p1001_p9 = pnand %p1000_p8, %p994_p5 }
  0x1a   :  { %46 = vrot.lane.b32.xlu1 %v1055_v1, %s1019_s12  ;;  %42 = vrot.lane.b32.xlu0 %v1041_v0, %s1024_s16 }
  0x1e   :  { %52 = vrot.lane.b32.xlu1 %v1055_v1, %s1018_s11  ;;  %49 = vrot.lane.b32.xlu0 %v1055_v1, %s1021_s14 }
  0x22   :  { %58 = vrot.lane.b32.xlu1 %v1055_v1, %s1023_s15  ;;  %55 = vrot.lane.b32.xlu0 %v1055_v1, %s1020_s13 }
  0x26   :  { %64 = vrot.lane.b32.xlu1 %v1055_v1, %s1024_s16  ;;  %61 = vrot.lane.b32.xlu0 %v1055_v1, %s1022_s0 }
  0x80   :  { %v31_v2 = vpop.permute.xlu1 %30  ;;  %v25_v3 = vpop.permute.xlu0 %24 }
  0x81   :  { %v83_v17 = vcombine.low %v25_v3, %v31_v2  ;;  %v84_v45 = vcombine.high %v25_v3, %v31_v2 }
  0x83   :  { %v91_v24 = vrot.slane %v83_v17, %v1074_v16  ;;  %v98_v60 = vrot.slane %v84_v45, %v1074_v16 }
  0x84   :  { %v34_v7 = vpop.permute.xlu1 %33  ;;  %v28_v8 = vpop.permute.xlu0 %27 }
  0x85   :  { %v67_v11 = vcombine.low %v1041_v0, %v28_v8  ;;  %v68_v39 = vcombine.high %v1041_v0, %v28_v8 }
  0x87   :  { %v1077_v18 = vrot.slane %v67_v11, %v1074_v16  ;;  %v82_v53 = vrot.slane %v68_v39, %v1074_v16 }
  0x88   :  { %v40_v12 = vpop.permute.xlu1 %39  ;;  %v37_v13 = vpop.permute.xlu0 %36 }
  0x89   :  { %v99_v19 = vcombine.low %v34_v7, %v40_v12  ;;  %v131_v29 = vcombine.low %v1077_v18, %v91_v24  ;;  %v100_v40 = vcombine.high %v34_v7, %v40_v12  ;;  %v147_v3 = vcombine.low %v82_v53, %v98_v60 }
  0x8a   :  { %v132_v4 = vcombine.high %v1077_v18, %v91_v24 }
  0x8b   :  { %v107_v26 = vrot.slane %v99_v19, %v1074_v16  ;;  %v139_v37 = vrot.slane %v131_v29, %v1083_v30  ;;  %v114_v54 = vrot.slane %v100_v40, %v1074_v16  ;;  %v155_v14 = vrot.slane %v147_v3, %v1083_v30 }
  0x8c   :  { %v47_v20 = vpop.permute.xlu1 %46  ;;  %v43_v21 = vpop.permute.xlu0 %42  ;;  %v146_v18 = vrot.slane %v132_v4, %v1083_v30 }
  0x8d   :  { %v115_v23 = vcombine.low %v37_v13, %v43_v21  ;;  %v116_v34 = vcombine.high %v37_v13, %v43_v21 }
  0x8f   :  { %v123_v25 = vrot.slane %v115_v23, %v1074_v16  ;;  %v130_v46 = vrot.slane %v116_v34, %v1074_v16 }
  0x90   :  { %v53_v27 = vpop.permute.xlu1 %52  ;;  %v50_v28 = vpop.permute.xlu0 %49 }
  0x91   :  { %v163_v31 = vcombine.low %v107_v26, %v123_v25  ;;  %v219_v32 = vcombine.low %v47_v20, %v53_v27  ;;  %v203_v33 = vcombine.low %v1055_v1, %v50_v28  ;;  %v220_v55 = vcombine.high %v47_v20, %v53_v27 }
  0x92   :  { %v204_v56 = vcombine.high %v1055_v1, %v50_v28  ;;  %v179_v61 = vcombine.low %v114_v54, %v130_v46  ;;  %v164_v62 = vcombine.high %v107_v26, %v123_v25  ;;  %v180_v19 = vcombine.high %v114_v54, %v130_v46 }
  0x93   :  { %v171_v38 = vrot.slane %v163_v31, %v1083_v30  ;;  %v227_v43 = vrot.slane %v219_v32, %v1074_v16  ;;  %v211_v44 = vrot.slane %v203_v33, %v1074_v16  ;;  %v234_v5 = vrot.slane %v220_v55, %v1074_v16 }
  0x94   :  { %v59_v35 = vpop.permute.xlu1 %58  ;;  %v56_v36 = vpop.permute.xlu0 %55  ;;  %v218_v1 = vrot.slane %v204_v56, %v1074_v16  ;;  %v187_v8 = vrot.slane %v179_v61, %v1083_v30  ;;  %v178_v9 = vrot.slane %v164_v62, %v1083_v30  ;;  %v148_v26 = vcombine.high %v82_v53, %v98_v60 }
  0x95   :  { %v196_v41 = vcombine.high %v139_v37, %v171_v38  ;;  %v195_v42 = vcombine.low %v139_v37, %v171_v38  ;;  %v267_v57 = vcombine.low %v211_v44, %v227_v43  ;;  %v268_v15 = vcombine.high %v211_v44, %v227_v43 }
  0x96   :  { %v283_v17 = vcombine.low %v218_v1, %v234_v5  ;;  %v199_v20 = vcombine.low %v155_v14, %v187_v8  ;;  %v197_v21 = vcombine.low %v146_v18, %v178_v9  ;;  %v194_v31 = vrot.slane %v180_v19, %v1083_v30 }
  0x97   :  { %371 = vxpose.xlu1.b32.start [1/2] (short) (narrow) %v196_v41, 16  ;;  %339 = vxpose.xlu0.b32.start [1/2] (short) (narrow) %v195_v42, 16  ;;  %v275_v6 = vrot.slane %v267_v57, %v1083_v30  ;;  %v282_v25 = vrot.slane %v268_v15, %v1083_v30  ;;  %v284_v32 = vcombine.high %v218_v1, %v234_v5 }
  0x98   :  { %v65_v47 = vpop.permute.xlu1 %64  ;;  %v62_v48 = vpop.permute.xlu0 %61  ;;  %v291_v24 = vrot.slane %v283_v17, %v1083_v30  ;;  %v162_v33 = vrot.slane %v148_v26, %v1083_v30  ;;  %v200_v40 = vcombine.high %v155_v14, %v187_v8 }
  0x99   :  { %v251_v49 = vcombine.low %v59_v35, %v65_v47  ;;  %v252_v50 = vcombine.high %v59_v35, %v65_v47  ;;  %v235_v51 = vcombine.low %v56_v36, %v62_v48  ;;  %v236_v52 = vcombine.high %v56_v36, %v62_v48 }
  0x9a   :  { %v201_v34 = vcombine.low %v162_v33, %v194_v31  ;;  %v198_v35 = vcombine.high %v146_v18, %v178_v9  ;;  %v298_v37 = vrot.slane %v284_v32, %v1083_v30  ;;  %v202_v42 = vcombine.high %v162_v33, %v194_v31 }
  0x9b   :  { %v259_v58 = vrot.slane %v251_v49, %v1074_v16  ;;  %v243_v59 = vrot.slane %v235_v51, %v1074_v16  ;;  %v266_v63 = vrot.slane %v252_v50, %v1074_v16  ;;  %v250_v0 = vrot.slane %v236_v52, %v1074_v16 }
  0x9d   :  { %v299_v2 = vcombine.low %v243_v59, %v259_v58  ;;  %v300_v10 = vcombine.high %v243_v59, %v259_v58  ;;  %v315_v11 = vcombine.low %v250_v0, %v266_v63  ;;  %v316_v27 = vcombine.high %v250_v0, %v266_v63 }
  0x9f   :  { %v307_v7 = vrot.slane %v299_v2, %v1083_v30  ;;  %v323_v22 = vrot.slane %v315_v11, %v1083_v30  ;;  %v314_v23 = vrot.slane %v300_v10, %v1083_v30  ;;  %v330_v36 = vrot.slane %v316_v27, %v1083_v30 }
  0xa1   :  { %v332_v12 = vcombine.high %v275_v6, %v307_v7  ;;  %v331_v13 = vcombine.low %v275_v6, %v307_v7  ;;  %v335_v28 = vcombine.low %v291_v24, %v323_v22  ;;  %v333_v29 = vcombine.low %v282_v25, %v314_v23 }
  0xa2   :  { %v337_v38 = vcombine.low %v298_v37, %v330_v36  ;;  %v334_v39 = vcombine.high %v282_v25, %v314_v23  ;;  %v336_v41 = vcombine.high %v291_v24, %v323_v22  ;;  %v338_v43 = vcombine.high %v298_v37, %v330_v36 }
  0xa3   :  { %372 = vxpose.xlu1.b32.end [2/2] (short) (narrow) %v332_v12, 16  ;;  %340 = vxpose.xlu0.b32.end [2/2] (short) (narrow) %v331_v13, 16 }
  0xa7   :  { %467 = vxpose.xlu1.b32.start [1/2] (short) (narrow) %v199_v20, 16  ;;  %403 = vxpose.xlu0.b32.start [1/2] (short) (narrow) %v197_v21, 16 }
  0xab   :  { %468 = vxpose.xlu1.b32.end [2/2] (short) (narrow) %v335_v28, 16  ;;  %404 = vxpose.xlu0.b32.end [2/2] (short) (narrow) %v333_v29, 16 }
  0xaf   :  { %531 = vxpose.xlu1.b32.start [1/2] (short) (narrow) %v201_v34, 16  ;;  %435 = vxpose.xlu0.b32.start [1/2] (short) (narrow) %v198_v35, 16 }
  0xb3   :  { %532 = vxpose.xlu1.b32.end [2/2] (short) (narrow) %v337_v38, 16  ;;  %436 = vxpose.xlu0.b32.end [2/2] (short) (narrow) %v334_v39, 16 }
  0xb7   :  { %499 = vxpose.xlu0.b32.start [1/2] (short) (narrow) %v200_v40, 16 }
  0xbb   :  { %500 = vxpose.xlu0.b32.end [2/2] (short) (narrow) %v336_v41, 16 }
  0xbf   :  { %563 = vxpose.xlu0.b32.start [1/2] (short) (narrow) %v202_v42, 16 }
  0xc3   :  { %564 = vxpose.xlu0.b32.end [2/2] (short) (narrow) %v338_v43, 16 }
 0x11b   :  { %v355_v44 = vpop.trf.xlu0  ;;  %v387_v45 = vpop.trf.xlu1 }
 0x11f   :  { %v1117_v46 = vpop.trf.xlu0  ;;  %v1119_v48 = vpop.trf.xlu1 }
 0x123   :  { %v419_v47 = vpop.trf.xlu0  ;;  %v483_v50 = vpop.trf.xlu1 }
 0x124   :  { %v595_v59 = vcombine.low %v355_v44, %v419_v47  ;;  %v596_v60 = vcombine.high %v355_v44, %v419_v47 }
 0x126   :  { %v603_v3 = vrot.slane %v595_v59, %v1074_v16  ;;  %v610_v4 = vrot.slane %v596_v60, %v1074_v16 }
 0x127   :  { %v1121_v49 = vpop.trf.xlu0  ;;  %v1125_v53 = vpop.trf.xlu1 }
 0x128   :  { %v731_v14 = vcombine.low %v1117_v46, %v1121_v49 }
 0x12a   :  { %v739_v28 = vrot.slane %v731_v14, %v1074_v16 }
 0x12b   :  { %v451_v51 = vpop.trf.xlu0  ;;  %v547_v57 = vpop.trf.xlu1 }
 0x12c   :  { %v611_v55 = vcombine.low %v387_v45, %v451_v51  ;;  %v612_v56 = vcombine.high %v387_v45, %v451_v51  ;;  %v627_v61 = vcombine.low %v483_v50, %v547_v57  ;;  %v628_v62 = vcombine.high %v483_v50, %v547_v57 }
 0x12e   :  { %v619_v63 = vrot.slane %v611_v55, %v1074_v16  ;;  %v626_v0 = vrot.slane %v612_v56, %v1074_v16  ;;  %v635_v8 = vrot.slane %v627_v61, %v1074_v16  ;;  %v642_v9 = vrot.slane %v628_v62, %v1074_v16 }
 0x12f   :  { %v1123_v52 = vpop.trf.xlu0  ;;  %v548_v5 = vpop.trf.xlu1  ;;  %v732_v55 = vcombine.high %v1117_v46, %v1121_v49 }
 0x130   :  { %v747_v7 = vcombine.low %v1119_v48, %v1123_v52  ;;  %v659_v10 = vcombine.low %v603_v3, %v619_v63  ;;  %v675_v11 = vcombine.low %v610_v4, %v626_v0  ;;  %v763_v15 = vcombine.low %v1125_v53, %v548_v5 }
 0x131   :  { %v660_v21 = vcombine.high %v603_v3, %v619_v63  ;;  %v676_v45 = vcombine.high %v610_v4, %v626_v0  ;;  %v748_v50 = vcombine.high %v1119_v48, %v1123_v52  ;;  %v746_v49 = vrot.slane %v732_v55, %v1074_v16 }
 0x132   :  { %v755_v22 = vrot.slane %v747_v7, %v1074_v16  ;;  %v683_v24 = vrot.slane %v675_v11, %v1083_v30  ;;  %v1144_v26 = vrot.slane %v659_v10, %v1083_v30  ;;  %v771_v29 = vrot.slane %v763_v15, %v1074_v16 }
 0x133   :  { %v515_v54 = vpop.trf.xlu0  ;;  %v674_v37 = vrot.slane %v660_v21, %v1083_v30  ;;  %v762_v60 = vrot.slane %v748_v50, %v1074_v16 }
 0x134   :  { %v795_v35 = vcombine.low %v739_v28, %v755_v22  ;;  %v796_v51 = vcombine.high %v739_v28, %v755_v22 }
 0x135   :  { %v812_v7 = vcombine.high %v746_v49, %v762_v60 }
 0x136   :  { %v1164_v47 = vrot.slane %v795_v35, %v1083_v30  ;;  %v810_v46 = vrot.slane %v796_v51, %v1083_v30 }
 0x137   :  { %v516_v58 = vpop.trf.xlu0  ;;  %v826_v10 = vrot.slane %v812_v7, %v1083_v30 }
 0x13b   :  { %v579_v2 = vpop.trf.xlu0 }
 0x13c   :  { %v643_v1 = vcombine.low %v515_v54, %v579_v2  ;;  %v644_v6 = vcombine.high %v515_v54, %v579_v2  ;;  %v764_v54 = vcombine.high %v1125_v53, %v548_v5  ;;  %v690_v53 = vrot.slane %v676_v45, %v1083_v30 }
 0x13d   :  { %v811_v2 = vcombine.low %v746_v49, %v762_v60 }
 0x13e   :  { %v651_v12 = vrot.slane %v643_v1, %v1074_v16  ;;  %v658_v13 = vrot.slane %v644_v6, %v1074_v16  ;;  %v778_v61 = vrot.slane %v764_v54, %v1074_v16 }
 0x13f   :  { %v580_v17 = vpop.trf.xlu0  ;;  %v819_v1 = vrot.slane %v811_v2, %v1083_v30 }
 0x140   :  { %v691_v18 = vcombine.low %v635_v8, %v651_v12  ;;  %v692_v19 = vcombine.high %v635_v8, %v651_v12  ;;  %v707_v20 = vcombine.low %v642_v9, %v658_v13  ;;  %v779_v23 = vcombine.low %v516_v58, %v580_v17 }
 0x141   :  { %v708_v38 = vcombine.high %v642_v9, %v658_v13  ;;  %v780_v39 = vcombine.high %v516_v58, %v580_v17 }
 0x142   :  { %v715_v25 = vrot.slane %v707_v20, %v1083_v30  ;;  %v1147_v27 = vrot.slane %v691_v18, %v1083_v30  ;;  %v787_v31 = vrot.slane %v779_v23, %v1074_v16  ;;  %v706_v34 = vrot.slane %v692_v19, %v1083_v30 }
 0x143   :  { %v722_v56 = vrot.slane %v708_v38, %v1083_v30  ;;  %v794_v58 = vrot.slane %v780_v39, %v1074_v16 }
 0x144   :  { %v727_v32 = vcombine.low %v683_v24, %v715_v25  ;;  %v724_v33 = vcombine.high %v1144_v26, %v1147_v27  ;;  %v827_v36 = vcombine.low %v771_v29, %v787_v31  ;;  %v828_v41 = vcombine.high %v771_v29, %v787_v31 }
 0x145   :  { %v728_v42 = vcombine.high %v683_v24, %v715_v25  ;;  %v725_v43 = vcombine.low %v674_v37, %v706_v34  ;;  %v723_v44 = vcombine.low %v1144_v26, %v1147_v27  ;;  %v726_v59 = vcombine.high %v674_v37, %v706_v34 }
 0x146   :  { %880 = vrot.lane.b32.xlu0 %v727_v32, %s1020_s13  ;;  %868 = vrot.lane.b32.xlu1 %v724_v33, %s1024_s16  ;;  %v1159_v40 = vrot.slane %v827_v36, %v1083_v30  ;;  %v842_v52 = vrot.slane %v828_v41, %v1083_v30  ;;  %v843_v62 = vcombine.low %v778_v61, %v794_v58 }
 0x147   :  { %v729_v0 = vcombine.low %v690_v53, %v722_v56  ;;  %v730_v4 = vcombine.high %v690_v53, %v722_v56  ;;  %v844_v6 = vcombine.high %v778_v61, %v794_v58 }
 0x148   :  { %v859_v57 = vcombine.low %v1164_v47, %v1159_v40  ;;  %v860_v48 = vcombine.high %v1164_v47, %v1159_v40  ;;  %v861_v63 = vcombine.low %v810_v46, %v842_v52  ;;  %v862_v3 = vcombine.high %v810_v46, %v842_v52 }
 0x149   :  { %v851_v5 = vrot.slane %v843_v62, %v1083_v30  ;;  %v858_v9 = vrot.slane %v844_v6, %v1083_v30 }
 0x14a   :  { %884 = vrot.lane.b32.xlu0 %v728_v42, %s1018_s11  ;;  %872 = vrot.lane.b32.xlu1 %v725_v43, %s1022_s0 }
 0x14b   :  { %v863_v16 = vcombine.low %v819_v1, %v851_v5  ;;  %v864_v8 = vcombine.high %v819_v1, %v851_v5  ;;  %v865_v11 = vcombine.low %v826_v10, %v858_v9  ;;  %v866_v12 = vcombine.high %v826_v10, %v858_v9 }
 0x14e   :  { %876 = vrot.lane.b32.xlu1 %v726_v59, %s1023_s15  ;;  %896 = vrot.lane.b32.xlu0 %v860_v48, %s1024_s16 }
 0x152   :  { %900 = vrot.lane.b32.xlu1 %v861_v63, %s1022_s0  ;;  %888 = vrot.lane.b32.xlu0 %v729_v0, %s1021_s14 }
 0x156   :  { %904 = vrot.lane.b32.xlu1 %v862_v3, %s1023_s15  ;;  %892 = vrot.lane.b32.xlu0 %v730_v4, %s1019_s12 }
 0x15a   :  { %908 = vrot.lane.b32.xlu1 %v863_v16, %s1020_s13 }
 0x15e   :  { %912 = vrot.lane.b32.xlu1 %v864_v8, %s1018_s11 }
 0x162   :  { %916 = vrot.lane.b32.xlu1 %v865_v11, %s1021_s14 }
 0x166   :  { %920 = vrot.lane.b32.xlu1 %v866_v12, %s1019_s12 }
 0x1b8   :  { %v869_v13 = vpop.permute.xlu1 %868  ;;  %v881_v14 = vpop.permute.xlu0 %880 }
 0x1b9   :  { %v924_v18 = vsel %vm923_vm0, %v723_v44, %v869_v13 }
 0x1bc   :  { %v873_v15 = vpop.permute.xlu1 %872  ;;  %v885_v17 = vpop.permute.xlu0 %884 }
 0x1bd   :  { %v926_v19 = vsel %vm925_vm1, %v924_v18, %v873_v15 }
 0x1c0   :  { %v877_v20 = vpop.permute.xlu1 %876  ;;  %v897_v30 = vpop.permute.xlu0 %896 }
 0x1c1   :  { %v928_v21 = vsel %vm927_vm2, %v926_v19, %v877_v20  ;;  %v937_v33 = vsel %vm923_vm0, %v859_v57, %v897_v30 }
 0x1c2   :  { %v930_v22 = vsel %vm929_vm3, %v928_v21, %v881_v14 }
 0x1c3   :  { %v932_v25 = vsel %vm931_vm4, %v930_v22, %v885_v17 }
 0x1c4   :  { %v901_v23 = vpop.permute.xlu1 %900  ;;  %v889_v24 = vpop.permute.xlu0 %888 }
 0x1c5   :  { %v934_v26 = vsel %vm933_vm5, %v932_v25, %v889_v24  ;;  %v938_v34 = vsel %vm925_vm1, %v937_v33, %v901_v23 }
 0x1c8   :  { %v905_v27 = vpop.permute.xlu1 %904  ;;  %v893_v28 = vpop.permute.xlu0 %892 }
 0x1c9   :  { %v936_v29 = vsel %vm935_vm6, %v934_v26, %v893_v28  ;;  %v939_v36 = vsel %vm927_vm2, %v938_v34, %v905_v27 }
 0x1ca   :  { %944 = vst [vmem:[#allocation5] sm:$0xff] %v936_v29 }
 0x1cc   :  { %v909_v31 = vpop.permute.xlu1 %908 }
 0x1cd   :  { %v940_v37 = vsel %vm929_vm3, %v939_v36, %v909_v31 }
 0x1d0   :  { %v913_v32 = vpop.permute.xlu1 %912 }
 0x1d1   :  { %v941_v38 = vsel %vm931_vm4, %v940_v37, %v913_v32 }
 0x1d4   :  { %v917_v35 = vpop.permute.xlu1 %916 }
 0x1d5   :  { %v942_v39 = vsel %vm933_vm5, %v941_v38, %v917_v35 }
 0x1d8   :  { %v921_v41 = vpop.permute.xlu1 %920 }
 0x1d9   :  { %v943_v42 = vsel %vm935_vm6, %v942_v39, %v921_v41 }
 0x1da   :  { %945 = vst [vmem:[#allocation5 + $0x8] sm:$0xff] %v943_v42 }
 0x1db   :  { %1004 = shalt.err (!%p1001_p9)
}
 0x1dc   :  { %955 = dma.vmem_to_hbm [thread:$0]  %s953_s18, 256, %s1220_s1, [#allocation4]  }
 0x1dd   :  { %1015 = dma.done.wait [#allocation4], 256  }
 0x1de   :  { %1016 = vsyncadd [#allocation4], 4294967040 }
 0x1df   :  { %959 = vsyncpa [#allocation3], 1 }
 0x1e0   :  { %960 = vsyncpa [#allocation4], 1 }

// kernel: tpu_custom_call.1
= control target key start
LH: loop header
LB: loop body
LE: loop exit
PB: predicated region body
PF: predicated region fallthrough
CT: control target
= control target key end

     0   :  { %6 = vsyncpa [#allocation3], 0  ;;  %s802_s0 = inlined_call_operand.hbm [shape: f32[8,16,16], index: 0, kind: input, shape index: {}]   ;;  %s803_s1 = inlined_call_operand.hbm [shape: f32[8,256], index: 1, kind: output, shape index: {}]  }
   0x1   :  { %7 = vsyncpa [#allocation4], 0  ;;  %s719_s6 = smov [#allocation2]  }
   0x2   :  { %s13_s7 = sshll.u32 %s719_s6, 4  ;;  %s14_s7 = int_to_ptr.vmem [resolvable:$true] %s13_s7 }
   0x3   :  { %s683_s8 = scalar_lea.vmem %s14_s7, 2048  ;;  %p688_p1 = scmp.lt.s32.totalorder %s14_s7, %s14_s7 }
   0x4   :  { %p684_p0 = scmp.ne.s32.totalorder %s14_s7, %s683_s8  ;;  %p689_p2 = scmp.lt.s32.totalorder %s683_s8, %s683_s8 }
   0x6   :  { %p690_p3 = por %p689_p2, %p688_p1 }
   0x8   :  { %p691_p4 = pnand %p690_p3, %p684_p0 }
   0xa   :  { %694 = shalt.err (!%p691_p4)
}
   0xb   :  { %s720_s9 = smov 128   ;;  %s721_s10 = smov 8  }
   0xc   :  { %19 = dma.hbm_to_vmem [thread:$0]  %s802_s0, 2048, %s14_s7, [#allocation3], %s720_s9, %s720_s9, %s721_s10  }
   0xd   :  { %715 = dma.done.wait [#allocation3], 2048  }
   0xe   :  { %716 = vsyncadd [#allocation3], 4294965248  ;;  %v25_v0 = vld [vmem:[#allocation2 + $0x10] sm:$0xff]  ;;  %v23_v1 = vld [vmem:[#allocation2] sm:$0xff]  ;;  %v722_v20 = vmov 1983009808   ;;  %v300_v22 = vlaneseq }
   0xf   :  { %71 = vxpose.xlu1.b32.start [1/2] (short) (narrow) %v25_v0, 16  ;;  %39 = vxpose.xlu0.b32.start [1/2] (short) (narrow) %v23_v1, 16  ;;  %v26_v2 = vld [vmem:[#allocation2 + $0x18] sm:$0xff]  ;;  %v24_v3 = vld [vmem:[#allocation2 + $0x8] sm:$0xff]  ;;  %v29_v4 = vld [vmem:[#allocation2 + $0x30] sm:$0xff]  ;;  %v298_v21 = vunpack.c.l.s4 %v722_v20  ;;  %s724_s0 = smov 32  }
  0x10   :  { %v27_v5 = vld [vmem:[#allocation2 + $0x20] sm:$0xff]  ;;  %v30_v6 = vld [vmem:[#allocation2 + $0x38] sm:$0xff]  ;;  %v28_v7 = vld [vmem:[#allocation2 + $0x28] sm:$0xff]  ;;  %v301_v26 = vshrl.u32 %v300_v22, 7  ;;  %v723_v29 = vmov 1934713408  }
  0x11   :  { %v33_v8 = vld [vmem:[#allocation2 + $0x50] sm:$0xff]  ;;  %v31_v9 = vld [vmem:[#allocation2 + $0x40] sm:$0xff]  ;;  %v34_v10 = vld [vmem:[#allocation2 + $0x58] sm:$0xff]  ;;  %v299_v25 = vunpack.c.0.s8 %v298_v21  ;;  %v362_v30 = vunpack.c.l.s4 %v723_v29  ;;  %s725_s13 = smov 16   ;;  %s726_s14 = smov 48   ;;  %vm623_vm0 = vcmask 130048  }
  0x12   :  { %v32_v11 = vld [vmem:[#allocation2 + $0x48] sm:$0xff]  ;;  %v37_v12 = vld [vmem:[#allocation2 + $0x70] sm:$0xff]  ;;  %v35_v13 = vld [vmem:[#allocation2 + $0x60] sm:$0xff]  ;;  %s727_s15 = smov 64   ;;  %s728_s16 = smov 80   ;;  %vm625_vm1 = vcmask 261120  }
  0x13   :  { %72 = vxpose.xlu1.b32.end [2/2] (short) (narrow) %v26_v2, 16  ;;  %40 = vxpose.xlu0.b32.end [2/2] (short) (narrow) %v24_v3, 16  ;;  %v38_v14 = vld [vmem:[#allocation2 + $0x78] sm:$0xff]  ;;  %v36_v15 = vld [vmem:[#allocation2 + $0x68] sm:$0xff]  ;;  %v302_v31 = vsub.s32 %v299_v25, %v301_v26  ;;  %v363_v36 = vunpack.c.0.s8 %v362_v30  ;;  %s729_s17 = smov 96   ;;  %s730_s18 = smov 112  }
  0x14   :  { %vm627_vm2 = vcmask 392192   ;;  %vm629_vm3 = vcmask 523264   ;;  %vm633_vm4 = vcmask 785408   ;;  %vm631_vm5 = vcmask 654336   ;;  %s731_s19 = smov [#allocation5]  }
  0x15   :  { %v745_v44 = vsub.s32 %v363_v36, %v301_v26  ;;  %vm635_vm6 = vcmask 916480   ;;  %s652_s20 = sshll.u32 %s731_s19, 4  ;;  %s653_s20 = int_to_ptr.vmem [resolvable:$true] %s652_s20 }
  0x16   :  { %s695_s21 = scalar_lea.vmem %s653_s20, 256  ;;  %p700_p6 = scmp.lt.s32.totalorder %s653_s20, %s653_s20 }
  0x17   :  { %135 = vxpose.xlu1.b32.start [1/2] (short) (narrow) %v29_v4, 16  ;;  %103 = vxpose.xlu0.b32.start [1/2] (short) (narrow) %v27_v5, 16  ;;  %p696_p5 = scmp.ne.s32.totalorder %s653_s20, %s695_s21  ;;  %p701_p7 = scmp.lt.s32.totalorder %s695_s21, %s695_s21 }
  0x19   :  { %p702_p8 = por %p701_p7, %p700_p6 }
  0x1b   :  { %136 = vxpose.xlu1.b32.end [2/2] (short) (narrow) %v30_v6, 16  ;;  %104 = vxpose.xlu0.b32.end [2/2] (short) (narrow) %v28_v7, 16  ;;  %p703_p9 = pnand %p702_p8, %p696_p5 }
  0x1f   :  { %199 = vxpose.xlu1.b32.start [1/2] (short) (narrow) %v33_v8, 16  ;;  %167 = vxpose.xlu0.b32.start [1/2] (short) (narrow) %v31_v9, 16 }
  0x23   :  { %200 = vxpose.xlu1.b32.end [2/2] (short) (narrow) %v34_v10, 16  ;;  %168 = vxpose.xlu0.b32.end [2/2] (short) (narrow) %v32_v11, 16 }
  0x27   :  { %263 = vxpose.xlu1.b32.start [1/2] (short) (narrow) %v37_v12, 16  ;;  %231 = vxpose.xlu0.b32.start [1/2] (short) (narrow) %v35_v13, 16 }
  0x2b   :  { %264 = vxpose.xlu1.b32.end [2/2] (short) (narrow) %v38_v14, 16  ;;  %232 = vxpose.xlu0.b32.end [2/2] (short) (narrow) %v36_v15, 16 }
  0x8b   :  { %v87_v16 = vpop.trf.xlu1  ;;  %v55_v17 = vpop.trf.xlu0 }
  0x8f   :  { %v88_v18 = vpop.trf.xlu1  ;;  %v56_v19 = vpop.trf.xlu0 }
  0x93   :  { %v151_v23 = vpop.trf.xlu1  ;;  %v119_v24 = vpop.trf.xlu0 }
  0x94   :  { %v311_v32 = vcombine.low %v87_v16, %v151_v23  ;;  %v295_v33 = vcombine.low %v55_v17, %v119_v24  ;;  %v312_v41 = vcombine.high %v87_v16, %v151_v23  ;;  %v296_v45 = vcombine.high %v55_v17, %v119_v24 }
  0x96   :  { %v319_v37 = vrot.slane %v311_v32, %v302_v31  ;;  %v303_v38 = vrot.slane %v295_v33, %v302_v31  ;;  %v747_v55 = vrot.slane %v312_v41, %v302_v31  ;;  %v749_v61 = vrot.slane %v296_v45, %v302_v31 }
  0x97   :  { %v152_v27 = vpop.trf.xlu1  ;;  %v120_v28 = vpop.trf.xlu0 }
  0x98   :  { %v447_v42 = vcombine.low %v88_v18, %v152_v27  ;;  %v431_v43 = vcombine.low %v56_v19, %v120_v28  ;;  %v359_v46 = vcombine.low %v303_v38, %v319_v37  ;;  %v360_v47 = vcombine.high %v303_v38, %v319_v37 }
  0x99   :  { %v448_v48 = vcombine.high %v88_v18, %v152_v27  ;;  %v432_v56 = vcombine.high %v56_v19, %v120_v28  ;;  %v375_v26 = vcombine.low %v749_v61, %v747_v55 }
  0x9a   :  { %v455_v57 = vrot.slane %v447_v42, %v302_v31  ;;  %v439_v58 = vrot.slane %v431_v43, %v302_v31  ;;  %v374_v1 = vrot.slane %v360_v47, %v745_v44  ;;  %v755_v2 = vrot.slane %v359_v46, %v745_v44 }
  0x9b   :  { %v215_v34 = vpop.trf.xlu1  ;;  %v183_v35 = vpop.trf.xlu0  ;;  %v751_v62 = vrot.slane %v448_v48, %v302_v31  ;;  %v446_v11 = vrot.slane %v432_v56, %v302_v31  ;;  %v383_v37 = vrot.slane %v375_v26, %v745_v44 }
  0x9c   :  { %v496_v12 = vcombine.high %v439_v58, %v455_v57  ;;  %v495_v19 = vcombine.low %v439_v58, %v455_v57 }
  0x9d   :  { %v511_v27 = vcombine.low %v446_v11, %v751_v62  ;;  %v512_v43 = vcombine.high %v446_v11, %v751_v62 }
  0x9e   :  { %v510_v28 = vrot.slane %v496_v12, %v745_v44  ;;  %v503_v33 = vrot.slane %v495_v19, %v745_v44 }
  0x9f   :  { %v216_v39 = vpop.trf.xlu1  ;;  %v184_v40 = vpop.trf.xlu0  ;;  %v526_v48 = vrot.slane %v512_v43, %v745_v44 }
  0xa3   :  { %v279_v49 = vpop.trf.xlu1  ;;  %v247_v50 = vpop.trf.xlu0 }
  0xa4   :  { %v343_v51 = vcombine.low %v215_v34, %v279_v49  ;;  %v344_v52 = vcombine.high %v215_v34, %v279_v49  ;;  %v327_v53 = vcombine.low %v183_v35, %v247_v50  ;;  %v328_v54 = vcombine.high %v183_v35, %v247_v50 }
  0xa6   :  { %v351_v59 = vrot.slane %v343_v51, %v302_v31  ;;  %v335_v60 = vrot.slane %v327_v53, %v302_v31  ;;  %v757_v3 = vrot.slane %v344_v52, %v302_v31  ;;  %v759_v4 = vrot.slane %v328_v54, %v302_v31 }
  0xa7   :  { %v280_v63 = vpop.trf.xlu1  ;;  %v248_v0 = vpop.trf.xlu0  ;;  %v376_v52 = vcombine.high %v749_v61, %v747_v55 }
  0xa8   :  { %v391_v5 = vcombine.low %v335_v60, %v351_v59  ;;  %v392_v6 = vcombine.high %v335_v60, %v351_v59  ;;  %v479_v7 = vcombine.low %v216_v39, %v280_v63  ;;  %v480_v8 = vcombine.high %v216_v39, %v280_v63 }
  0xa9   :  { %v463_v9 = vcombine.low %v184_v40, %v248_v0  ;;  %v464_v10 = vcombine.high %v184_v40, %v248_v0  ;;  %v407_v20 = vcombine.low %v759_v4, %v757_v3  ;;  %v519_v39 = vrot.slane %v511_v27, %v745_v44 }
  0xaa   :  { %v406_v13 = vrot.slane %v392_v6, %v745_v44  ;;  %v763_v14 = vrot.slane %v391_v5, %v745_v44  ;;  %v487_v15 = vrot.slane %v479_v7, %v302_v31  ;;  %v494_v16 = vrot.slane %v480_v8, %v302_v31 }
  0xab   :  { %v471_v17 = vrot.slane %v463_v9, %v302_v31  ;;  %v478_v18 = vrot.slane %v464_v10, %v302_v31  ;;  %v415_v32 = vrot.slane %v407_v20, %v745_v44  ;;  %v408_v49 = vcombine.high %v759_v4, %v757_v3 }
  0xac   :  { %v425_v21 = vcombine.low %v374_v1, %v406_v13  ;;  %v424_v22 = vcombine.high %v755_v2, %v763_v14  ;;  %v426_v31 = vcombine.high %v374_v1, %v406_v13  ;;  %v423_v34 = vcombine.low %v755_v2, %v763_v14 }
  0xad   :  { %v527_v23 = vcombine.low %v471_v17, %v487_v15  ;;  %v528_v24 = vcombine.high %v471_v17, %v487_v15  ;;  %v543_v25 = vcombine.low %v478_v18, %v494_v16  ;;  %v427_v40 = vcombine.low %v383_v37, %v415_v32 }
  0xae   :  { %572 = vrot.lane.b32.xlu1 %v425_v21, %s724_s0  ;;  %568 = vrot.lane.b32.xlu0 %v424_v22, %s725_s13  ;;  %v544_v41 = vcombine.high %v478_v18, %v494_v16  ;;  %v428_v45 = vcombine.high %v383_v37, %v415_v32  ;;  %v422_v54 = vrot.slane %v408_v49, %v745_v44 }
  0xaf   :  { %v542_v29 = vrot.slane %v528_v24, %v745_v44  ;;  %v535_v30 = vrot.slane %v527_v23, %v745_v44  ;;  %v551_v36 = vrot.slane %v543_v25, %v745_v44  ;;  %v390_v57 = vrot.slane %v376_v52, %v745_v44 }
  0xb0   :  { %v558_v47 = vrot.slane %v544_v41, %v745_v44 }
  0xb1   :  { %v562_v35 = vcombine.high %v510_v28, %v542_v29  ;;  %v559_v38 = vcombine.low %v503_v33, %v535_v30  ;;  %v563_v42 = vcombine.low %v519_v39, %v551_v36  ;;  %v564_v46 = vcombine.high %v519_v39, %v551_v36 }
  0xb2   :  { %576 = vrot.lane.b32.xlu1 %v426_v31, %s726_s14  ;;  %v560_v50 = vcombine.high %v503_v33, %v535_v30  ;;  %v565_v51 = vcombine.low %v526_v48, %v558_v47  ;;  %v561_v53 = vcombine.low %v510_v28, %v542_v29  ;;  %v566_v56 = vcombine.high %v526_v48, %v558_v47 }
  0xb3   :  { %604 = vrot.lane.b32.xlu0 %v562_v35, %s726_s14  ;;  %v429_v58 = vcombine.low %v390_v57, %v422_v54  ;;  %v430_v59 = vcombine.high %v390_v57, %v422_v54 }
  0xb6   :  { %580 = vrot.lane.b32.xlu1 %v427_v40, %s727_s15 }
  0xb7   :  { %608 = vrot.lane.b32.xlu0 %v563_v42, %s727_s15 }
  0xba   :  { %584 = vrot.lane.b32.xlu1 %v428_v45, %s728_s16 }
  0xbb   :  { %612 = vrot.lane.b32.xlu0 %v564_v46, %s728_s16 }
  0xbe   :  { %596 = vrot.lane.b32.xlu1 %v560_v50, %s725_s13 }
  0xbf   :  { %616 = vrot.lane.b32.xlu0 %v565_v51, %s729_s17 }
  0xc2   :  { %600 = vrot.lane.b32.xlu1 %v561_v53, %s724_s0 }
  0xc3   :  { %620 = vrot.lane.b32.xlu0 %v566_v56, %s730_s18 }
  0xc6   :  { %588 = vrot.lane.b32.xlu1 %v429_v58, %s729_s17 }
  0xca   :  { %592 = vrot.lane.b32.xlu1 %v430_v59, %s730_s18 }
 0x120   :  { %v573_v60 = vpop.permute.xlu1 %572  ;;  %v569_v55 = vpop.permute.xlu0 %568 }
 0x121   :  { %v624_v6 = vsel %vm623_vm0, %v423_v34, %v569_v55 }
 0x122   :  { %v626_v10 = vsel %vm625_vm1, %v624_v6, %v573_v60 }
 0x124   :  { %v577_v61 = vpop.permute.xlu1 %576 }
 0x125   :  { %v605_v62 = vpop.permute.xlu0 %604  ;;  %v628_v13 = vsel %vm627_vm2, %v626_v10, %v577_v61 }
 0x128   :  { %v581_v63 = vpop.permute.xlu1 %580 }
 0x129   :  { %v609_v0 = vpop.permute.xlu0 %608  ;;  %v630_v16 = vsel %vm629_vm3, %v628_v13, %v581_v63 }
 0x12c   :  { %v585_v1 = vpop.permute.xlu1 %584 }
 0x12d   :  { %v613_v2 = vpop.permute.xlu0 %612  ;;  %v632_v18 = vsel %vm631_vm5, %v630_v16, %v585_v1 }
 0x130   :  { %v597_v3 = vpop.permute.xlu1 %596 }
 0x131   :  { %v617_v4 = vpop.permute.xlu0 %616  ;;  %v637_v5 = vsel %vm623_vm0, %v559_v38, %v597_v3 }
 0x134   :  { %v601_v44 = vpop.permute.xlu1 %600 }
 0x135   :  { %v638_v7 = vsel %vm625_vm1, %v637_v5, %v601_v44  ;;  %v621_v15 = vpop.permute.xlu0 %620 }
 0x136   :  { %v639_v8 = vsel %vm627_vm2, %v638_v7, %v605_v62 }
 0x137   :  { %v640_v9 = vsel %vm629_vm3, %v639_v8, %v609_v0 }
 0x138   :  { %v641_v11 = vsel %vm631_vm5, %v640_v9, %v613_v2  ;;  %v589_v12 = vpop.permute.xlu1 %588 }
 0x139   :  { %v642_v14 = vsel %vm633_vm4, %v641_v11, %v617_v4  ;;  %v634_v19 = vsel %vm633_vm4, %v632_v18, %v589_v12 }
 0x13a   :  { %v643_v17 = vsel %vm635_vm6, %v642_v14, %v621_v15 }
 0x13b   :  { %645 = vst [vmem:[#allocation5 + $0x8] sm:$0xff] %v643_v17 }
 0x13c   :  { %v593_v20 = vpop.permute.xlu1 %592 }
 0x13d   :  { %v636_v21 = vsel %vm635_vm6, %v634_v19, %v593_v20 }
 0x13e   :  { %644 = vst [vmem:[#allocation5] sm:$0xff] %v636_v21 }
 0x13f   :  { %706 = shalt.err (!%p703_p9)
}
 0x140   :  { %655 = dma.vmem_to_hbm [thread:$0]  %s653_s20, 256, %s803_s1, [#allocation4]  }
 0x141   :  { %717 = dma.done.wait [#allocation4], 256  }
 0x142   :  { %718 = vsyncadd [#allocation4], 4294967040 }
 0x143   :  { %659 = vsyncpa [#allocation3], 1 }
 0x144   :  { %660 = vsyncpa [#allocation4], 1 }

</bundles_post_ra>
